<compile_context>
chip_gen: v7x
topology: tpu7x:2x2x1
jax: 0.10.0
libtpu: 0.0.40
codegen_flags: <defaults>
</compile_context>

<pallas_src>
import functools

import jax
import jax.numpy as jnp
from jax import lax
from jax.experimental import pallas as pl
from jax.experimental.pallas import tpu as pltpu


def _cdiv(a, b):
    return -(-a // b)


def _round_up(a, m):
    return _cdiv(a, m) * m


def _vmem_capacity_bytes():
    """Physical VMEM of the attached TPU; fall back to the smallest (v7x: 64 MiB)."""
    try:
        return int(pltpu.get_tpu_info().vmem_capacity_bytes)
    except Exception:
        return 64 * 1024 * 1024


# ----------------------------------------------------------------------------
# Kernel 1: fused partial Gram matrices  G_r = real^T real,  G_f = fake^T fake
#           (X: [N, D] -> G: [D, D]), tiled over N, accumulated directly in the
#           VMEM-resident output blocks; grid = (row_group, n_tile).
# ----------------------------------------------------------------------------
def _gram_pair_kernel(xr_ref, xf_ref, or_ref, of_ref, *, mxu_dtype):
    k = pl.program_id(1)  # reduction step within this row group

    @pl.when(k == 0)
    def _():
        or_ref[...] = jnp.zeros_like(or_ref)
        of_ref[...] = jnp.zeros_like(of_ref)

    xr = xr_ref[...]
    xf = xf_ref[...]
    if mxu_dtype is not None and xr.dtype != mxu_dtype:
        # Optional reduced-precision MXU feed (f32 accumulation kept).
        xr = xr.astype(mxu_dtype)
        xf = xf.astype(mxu_dtype)

    # Contract over the row (N) axis directly: no explicit transpose before
    # the MXU; accumulation in f32 regardless of input dtype.
    dims = (((0,), (0,)), ((), ()))
    or_ref[...] += lax.dot_general(xr, xr, dims, preferred_element_type=jnp.float32)
    of_ref[...] += lax.dot_general(xf, xf, dims, preferred_element_type=jnp.float32)


def gram_pair(real, fake, *, mxu_dtype=None):
    n, d = real.shape
    assert fake.shape == (n, d), "real and fake must have the same shape"
    itemsize = real.dtype.itemsize
    pack = max(8, 32 // itemsize)  # sublane pack: 8 (f32), 16 (bf16), 32 (int8/fp8)

    vmem_cap = _vmem_capacity_bytes()
    usable = (vmem_cap * 3) // 4  # leave headroom for compiler scratch

    # 2 outputs x 2 pipeline buffers of (d, d) f32 blocks.
    out_bytes = 2 * 2 * d * d * 4
    min_in_bytes = 2 * 2 * pack * d * itemsize
    if out_bytes + min_in_bytes > usable:
        raise ValueError(
            f"DPP gram kernel: feature dim D={d} needs ~"
            f"{(out_bytes + min_in_bytes) / 2**20:.1f} MiB of VMEM for un-tiled "
            f"(D,D) outputs, exceeding the ~{usable / 2**20:.0f} MiB budget on this "
            "TPU; tile the output (D) dimension or reduce D.")

    # Row tile: biggest block that fits the budget, capped near 8 MiB per input
    # block (roofline plateaus well before that), rounded to the sublane pack.
    per_block = min((usable - out_bytes) // 4, 8 * 1024 * 1024)
    budget_tn = max(pack, (per_block // (d * itemsize)) // pack * pack)

    # Two row groups (one per v7x TensorCore). Pad N with zero rows so every
    # block is full (zero rows contribute nothing to X^T X) -> no boundary
    # masking, no awkward-N fallback.
    kb = 2 * max(1, _cdiv(n, 2 * budget_tn))   # even total number of row blocks
    tn = _round_up(_cdiv(n, kb), pack)         # rows per block (<= budget_tn)
    n_pad = kb * tn
    kh = kb // 2                               # reduction steps per row group

    if n_pad != n:
        pad = ((0, n_pad - n), (0, 0))
        real = jnp.pad(real, pad)
        fake = jnp.pad(fake, pad)

    vmem_needed = 4 * tn * d * itemsize + out_bytes
    vmem_limit = int(min(max(vmem_needed * 3 // 2, 32 * 1024 * 1024), usable))

    cost = pl.CostEstimate(
        flops=4 * n_pad * d * d,  # two matmuls, 2*N*D*D flops each
        transcendentals=0,
        bytes_accessed=2 * n_pad * d * itemsize + 4 * d * d * 4,
    )

    kernel = functools.partial(_gram_pair_kernel, mxu_dtype=mxu_dtype)

    out_r, out_f = pl.pallas_call(
        kernel,
        out_shape=(
            jax.ShapeDtypeStruct((2, d, d), jnp.float32),
            jax.ShapeDtypeStruct((2, d, d), jnp.float32),
        ),
        grid_spec=pltpu.PrefetchScalarGridSpec(
            num_scalar_prefetch=0,
            grid=(2, kh),
            in_specs=[
                pl.BlockSpec((tn, d), lambda g, k: (g * kh + k, 0)),
                pl.BlockSpec((tn, d), lambda g, k: (g * kh + k, 0)),
            ],
            out_specs=[
                pl.BlockSpec((None, d, d), lambda g, k: (g, 0, 0)),
                pl.BlockSpec((None, d, d), lambda g, k: (g, 0, 0)),
            ],
        ),
        compiler_params=pltpu.CompilerParams(
            dimension_semantics=("parallel", "arbitrary"),  # (core split, N reduction)
            vmem_limit_bytes=vmem_limit,
        ),
        cost_estimate=cost,
    )(real, fake)

    # Combine the two per-group partial Grams (tiny (D,D) adds in XLA).
    return out_r[0] + out_r[1], out_f[0] + out_f[1]


# ----------------------------------------------------------------------------
# Kernel 2: loss from eigenvalues / eigenvectors
#   lam_real, lam_fake : (1, D)  lane-dense row vectors
#   v_real,  v_fake    : (D, D)  eigenvectors in columns (torch.symeig layout)
#   output             : (1, 1)  scalar loss
# ----------------------------------------------------------------------------
def dpp_loss_kernel(lr_ref, lf_ref, vr_ref, vf_ref, o_ref):
    eps = jnp.float32(1e-8)

    lam_r = lr_ref[...]          # (1, D)
    lam_f = lf_ref[...]          # (1, D)
    v_r = vr_ref[...]            # (D, D)
    v_f = vf_ref[...]            # (D, D)

    # lambda_real_norm = lambda_real / lambda_real.sum()   (exact division)
    lam_r_sum = jnp.sum(lam_r, keepdims=True)                      # (1, 1)
    lam_r_norm = lam_r / lam_r_sum                                 # (1, D)

    # L_m = || lambda_real - lambda_fake ||_2   (lane-dense reduction)
    diff = lam_r - lam_f
    l_m = jnp.sqrt(jnp.sum(diff * diff, keepdims=True))            # (1, 1)

    # F.cosine_similarity(v_real, v_fake, dim=1): per-row cosine over the lane
    # axis; eps clamps the norm *product* (PyTorch convention).
    dot = jnp.sum(v_r * v_f, axis=1, keepdims=True)                # (D, 1)
    nr = jnp.sqrt(jnp.sum(v_r * v_r, axis=1, keepdims=True))
    nf = jnp.sqrt(jnp.sum(v_f * v_f, axis=1, keepdims=True))
    cos = dot / jnp.maximum(nr * nf, eps)                          # (D, 1)

    # L_s = -(lambda_real_norm . cos): contract (1,D)x(D,1) -> (1,1).
    l_s = -jnp.dot(lam_r_norm, cos, preferred_element_type=jnp.float32)

    o_ref[...] = l_m + l_s


def dpp_loss_from_eig(lam_r, lam_f, v_r, v_f):
    d = v_r.shape[0]
    return pl.pallas_call(
        dpp_loss_kernel,
        out_shape=jax.ShapeDtypeStruct((1, 1), jnp.float32),
        in_specs=[
            pl.BlockSpec((1, d), lambda: (0, 0)),
            pl.BlockSpec((1, d), lambda: (0, 0)),
            pl.BlockSpec((d, d), lambda: (0, 0)),
            pl.BlockSpec((d, d), lambda: (0, 0)),
        ],
        out_specs=pl.BlockSpec((1, 1), lambda: (0, 0)),
    )(lam_r, lam_f, v_r, v_f)


# ----------------------------------------------------------------------------
# Full DPP forward (matches DPP.forward(real, fake))
# ----------------------------------------------------------------------------
def dpp_forward(real, fake, *, use_bf16_matmul=False):
    # Both Gram matrices in a single fused Pallas call (f32 accumulation).
    # use_bf16_matmul=True feeds the MXU in bf16 (several x faster for large D);
    # kept off by default since the Gram feeds an eigendecomposition.
    mxu_dtype = jnp.bfloat16 if use_bf16_matmul else None
    s_b, d_b = gram_pair(real, fake, mxu_dtype=mxu_dtype)

    # torch.symeig(eigenvectors=True): ascending eigenvalues, column eigenvectors.
    # NOTE: eigenvector sign is ambiguous (inherited from the PyTorch reference).
    lam_real, v_real = jnp.linalg.eigh(s_b)
    lam_fake, v_fake = jnp.linalg.eigh(d_b)

    d = lam_real.shape[0]
    loss = dpp_loss_from_eig(
        lam_real.reshape(1, d),   # lane-dense eigenvalue layout
        lam_fake.reshape(1, d),
        v_real,
        v_fake,
    )
    return loss[0, 0]


if __name__ == "__main__":
    key = jax.random.PRNGKey(0)
    k1, k2 = jax.random.split(key)

    N, D = 16, 8
    real = jax.random.normal(k1, (N, D), dtype=jnp.float32)
    fake = jax.random.normal(k2, (N, D), dtype=jnp.float32)

    # --- sanity check the Gram kernel against plain JAX (f32) ---
    s_b, d_b = gram_pair(real, fake)
    s_ref = real.T @ real
    d_ref = fake.T @ fake
    assert jnp.allclose(s_b, s_ref, rtol=1e-2, atol=1e-2)
    assert jnp.allclose(d_b, d_ref, rtol=1e-2, atol=1e-2)

    # --- sanity check the loss kernel against plain JAX on the SAME eigh output ---
    lam_r, v_r = jnp.linalg.eigh(s_b)
    lam_f, v_f = jnp.linalg.eigh(d_b)
    loss_k = dpp_loss_from_eig(lam_r.reshape(1, D), lam_f.reshape(1, D), v_r, v_f)[0, 0]
    cos_ref = jnp.sum(v_r * v_f, axis=1) / jnp.maximum(
        jnp.linalg.norm(v_r, axis=1) * jnp.linalg.norm(v_f, axis=1), 1e-8)
    loss_ref = jnp.linalg.norm(lam_r - lam_f) - jnp.sum((lam_r / lam_r.sum()) * cos_ref)
    assert jnp.allclose(loss_k, loss_ref, rtol=1e-3, atol=1e-3)

    # --- full forward ---
    out = dpp_forward(real, fake)
    jax.block_until_ready(out)
    assert out.shape == () and jnp.isfinite(out)
    print("KERNEL_OK")
</pallas_src>

<mosaic_0001>
module attributes {stable_mosaic.version = 11 : i64} {
  func.func @_gram_pair_kernel(%arg0: i32, %arg1: i32, %arg2: memref<8x8xf32, #tpu.memory_space<vmem>>, %arg3: memref<8x8xf32, #tpu.memory_space<vmem>>, %arg4: memref<1x8x8xf32, #tpu.memory_space<vmem>>, %arg5: memref<1x8x8xf32, #tpu.memory_space<vmem>>) attributes {dimension_semantics = [#tpu.dimension_semantics<parallel>, #tpu.dimension_semantics<arbitrary>], iteration_bounds = array<i64: 2, 1>, scalar_prefetch = 0 : i64, scratch_operands = 0 : i64, tpu.core_type = #tpu.core_type<tc>, window_params = [{transform_indices = @transform_0, window_bounds = array<i64: 8, 8>}, {transform_indices = @transform_1, window_bounds = array<i64: 8, 8>}, {transform_indices = @transform_2, window_bounds = array<i64: 1, 8, 8>}, {transform_indices = @transform_3, window_bounds = array<i64: 1, 8, 8>}]} {
    %c0_i32 = arith.constant 0 : i32
    %0 = arith.cmpi eq, %arg1, %c0_i32 : i32
    %1 = arith.extui %0 : i1 to i32
    %c0_i32_0 = arith.constant 0 : i32
    %2 = arith.cmpi ne, %1, %c0_i32_0 : i32
    scf.if %2 {
      %cst_17 = arith.constant 0.000000e+00 : f32
      %19 = vector.broadcast %cst_17 : f32 to vector<8x8xf32>
      %c0_18 = arith.constant 0 : index
      %c0_19 = arith.constant 0 : index
      %c0_20 = arith.constant 0 : index
      %20 = vector.load %arg4[%c0_18, %c0_19, %c0_20] : memref<1x8x8xf32, #tpu.memory_space<vmem>>, vector<1x8x8xf32>
      %21 = vector.shape_cast %20 : vector<1x8x8xf32> to vector<8x8xf32>
      %22 = vector.shape_cast %19 : vector<8x8xf32> to vector<1x8x8xf32>
      tpu.vector_store %arg4[%c0_18, %c0_19, %c0_20], %22 {strides = array<i32>} : memref<1x8x8xf32, #tpu.memory_space<vmem>>, vector<1x8x8xf32>,
      %cst_21 = arith.constant 0.000000e+00 : f32
      %23 = vector.broadcast %cst_21 : f32 to vector<8x8xf32>
      %c0_22 = arith.constant 0 : index
      %c0_23 = arith.constant 0 : index
      %c0_24 = arith.constant 0 : index
      %24 = vector.load %arg5[%c0_22, %c0_23, %c0_24] : memref<1x8x8xf32, #tpu.memory_space<vmem>>, vector<1x8x8xf32>
      %25 = vector.shape_cast %24 : vector<1x8x8xf32> to vector<8x8xf32>
      %26 = vector.shape_cast %23 : vector<8x8xf32> to vector<1x8x8xf32>
      tpu.vector_store %arg5[%c0_22, %c0_23, %c0_24], %26 {strides = array<i32>} : memref<1x8x8xf32, #tpu.memory_space<vmem>>, vector<1x8x8xf32>,
    } else {
    }
    %c0 = arith.constant 0 : index
    %c0_1 = arith.constant 0 : index
    %3 = vector.load %arg2[%c0, %c0_1] : memref<8x8xf32, #tpu.memory_space<vmem>>, vector<8x8xf32>
    %c0_2 = arith.constant 0 : index
    %c0_3 = arith.constant 0 : index
    %4 = vector.load %arg3[%c0_2, %c0_3] : memref<8x8xf32, #tpu.memory_space<vmem>>, vector<8x8xf32>
    %c0_4 = arith.constant 0 : index
    %c0_5 = arith.constant 0 : index
    %c0_6 = arith.constant 0 : index
    %5 = vector.load %arg4[%c0_4, %c0_5, %c0_6] : memref<1x8x8xf32, #tpu.memory_space<vmem>>, vector<1x8x8xf32>
    %6 = vector.shape_cast %5 : vector<1x8x8xf32> to vector<8x8xf32>
    %cst = arith.constant dense<0.000000e+00> : vector<8x8xf32>
    %7 = tpu.matmul %3, %3, %cst {dimension_numbers = #tpu.dot_dimension_numbers<[0], [0], [1], [1], [0, 1, 1, 1], [], []>} : vector<8x8xf32>, vector<8x8xf32>, vector<8x8xf32> -> vector<8x8xf32>
    %8 = arith.addf %6, %7 : vector<8x8xf32>
    %c0_7 = arith.constant 0 : index
    %c0_8 = arith.constant 0 : index
    %c0_9 = arith.constant 0 : index
    %9 = vector.load %arg4[%c0_7, %c0_8, %c0_9] : memref<1x8x8xf32, #tpu.memory_space<vmem>>, vector<1x8x8xf32>
    %10 = vector.shape_cast %9 : vector<1x8x8xf32> to vector<8x8xf32>
    %11 = vector.shape_cast %8 : vector<8x8xf32> to vector<1x8x8xf32>
    tpu.vector_store %arg4[%c0_7, %c0_8, %c0_9], %11 {strides = array<i32>} : memref<1x8x8xf32, #tpu.memory_space<vmem>>, vector<1x8x8xf32>,
    %c0_10 = arith.constant 0 : index
    %c0_11 = arith.constant 0 : index
    %c0_12 = arith.constant 0 : index
    %12 = vector.load %arg5[%c0_10, %c0_11, %c0_12] : memref<1x8x8xf32, #tpu.memory_space<vmem>>, vector<1x8x8xf32>
    %13 = vector.shape_cast %12 : vector<1x8x8xf32> to vector<8x8xf32>
    %cst_13 = arith.constant dense<0.000000e+00> : vector<8x8xf32>
    %14 = tpu.matmul %4, %4, %cst_13 {dimension_numbers = #tpu.dot_dimension_numbers<[0], [0], [1], [1], [0, 1, 1, 1], [], []>} : vector<8x8xf32>, vector<8x8xf32>, vector<8x8xf32> -> vector<8x8xf32>
    %15 = arith.addf %13, %14 : vector<8x8xf32>
    %c0_14 = arith.constant 0 : index
    %c0_15 = arith.constant 0 : index
    %c0_16 = arith.constant 0 : index
    %16 = vector.load %arg5[%c0_14, %c0_15, %c0_16] : memref<1x8x8xf32, #tpu.memory_space<vmem>>, vector<1x8x8xf32>
    %17 = vector.shape_cast %16 : vector<1x8x8xf32> to vector<8x8xf32>
    %18 = vector.shape_cast %15 : vector<8x8xf32> to vector<1x8x8xf32>
    tpu.vector_store %arg5[%c0_14, %c0_15, %c0_16], %18 {strides = array<i32>} : memref<1x8x8xf32, #tpu.memory_space<vmem>>, vector<1x8x8xf32>,
    return
  }
  func.func @transform_0(%arg0: i32, %arg1: i32) -> (i32, i32) {
    %c1_i32 = arith.constant 1 : i32
    %0 = arith.muli %arg0, %c1_i32 : i32
    %1 = arith.addi %0, %arg1 : i32
    %c0_i32 = arith.constant 0 : i32
    %c0_i32_0 = arith.constant 0 : i32
    return %1, %c0_i32 : i32, i32
  }
  func.func @transform_1(%arg0: i32, %arg1: i32) -> (i32, i32) {
    %c1_i32 = arith.constant 1 : i32
    %0 = arith.muli %arg0, %c1_i32 : i32
    %1 = arith.addi %0, %arg1 : i32
    %c0_i32 = arith.constant 0 : i32
    %c0_i32_0 = arith.constant 0 : i32
    return %1, %c0_i32 : i32, i32
  }
  func.func @transform_2(%arg0: i32, %arg1: i32) -> (i32, i32, i32) {
    %c0_i32 = arith.constant 0 : i32
    %c0_i32_0 = arith.constant 0 : i32
    %c0_i32_1 = arith.constant 0 : i32
    return %arg0, %c0_i32, %c0_i32_0 : i32, i32, i32
  }
  func.func @transform_3(%arg0: i32, %arg1: i32) -> (i32, i32, i32) {
    %c0_i32 = arith.constant 0 : i32
    %c0_i32_0 = arith.constant 0 : i32
    %c0_i32_1 = arith.constant 0 : i32
    return %arg0, %c0_i32, %c0_i32_0 : i32, i32, i32
  }
}

</mosaic_0001>

<bundles_post_ra>
// kernel: tpu_custom_call.1
= control target key start
LH: loop header
LB: loop body
LE: loop exit
PB: predicated region body
PF: predicated region fallthrough
CT: control target
= control target key end

     0   :  { %9 = vsyncpa [#allocation3], 0  ;;  %s984_s0 = inlined_call_operand.vmem [shape: f32[16,8], index: 0, kind: input, shape index: {}]   ;;  %s985_s1 = inlined_call_operand.vmem [shape: f32[16,8], index: 1, kind: input, shape index: {}]   ;;  %s986_s2 = inlined_call_operand.hbm [shape: f32[2,8,8], index: 2, kind: output, shape index: {0}]   ;;  %s987_s3 = inlined_call_operand.hbm [shape: f32[2,8,8], index: 3, kind: output, shape index: {1}]  }
   0x1   :  { %11 = vsyncpa [#allocation3 + $0x1], 0 }
   0x2   :  { %12 = vsyncpa [#allocation5], 0 }
   0x3   :  { %14 = vsyncpa [#allocation5 + $0x1], 0  ;;  %s818_s12 = smov 0   ;;  %s820_s13 = smov 0  }
   0x4   :  { %s822_s14 = smov 0   ;;  %s824_s15 = smov 0  }
   0x5   :  { %s826_s16 = smov 0   ;;  %s828_s17 = smov 0  }
   0x6 LB: > { %s589_s18 = sadd.s32 4294967295, %s792_s17   ;;  %s590_s19 = sadd.s32 4294967294, %s792_s17   ;;  %s792_s17 = sphi %s828_s17, %s20_s17   ;;  %s788_s16 = sphi %s826_s16, %s994_s16   ;;  %s784_s15 = sphi %s824_s15, %s993_s15   ;;  %s780_s14 = sphi %s822_s14, %s992_s14   ;;  %s776_s13 = sphi %s820_s13, %s991_s13   ;;  %s772_s12 = sphi %s818_s12, %s990_s12  }
   0x7   : > { %s32_s20 = sadd.s32 1, %s788_s16  ;;  %s95_s21 = sadd.s32 1, %s780_s14 }
   0x8   : > { %p34_p0 = scmp.ge.s32.totalorder %s32_s20, 2  ;;  %p105_p1 = scmp.ne.s32.totalorder %s780_s14, %s776_s13 }
   0x9   : > { %p106_p2 = scmp.eq.s32.totalorder %s589_s18, 1  ;;  %p111_p3 = scmp.ne.s32.totalorder %s776_s13, %s772_s12 }
   0xa   : > { %s996_s20 = smov (%p34_p0, %s32_s20), 0  ;;  %p112_p5 = scmp.eq.s32.totalorder %s590_s19, 1 }
   0xb   : > { %p858_p4 = por %p106_p2, %p105_p1  ;;  %s92_s23 = ssub.s32 %s788_s16, %s996_s20 }
   0xc   : > { %p593_p6 = scmp.ge.s32.totalorder %s792_s17, 1  ;;  %p93_p7 = scmp.eq.s32.totalorder %s92_s23, 0 }
   0xd   : > { %p865_p8 = por %p112_p5, %p111_p3  ;;  %p174_p9 = scmp.lt.s32.totalorder %s792_s17, 3 }
   0xe   : > { %s871_s25 = scalar_select %p93_p7, %s780_s14, %s95_s21  }
   0xf   : > { %p175_p10 = pnand %p593_p6, %p174_p9 }
  0x10   : > { %p209_p11 = scmp.lt.s32.totalorder (!%p175_p10), %s784_s15, 1  ;;  %v794_v0 = vmov (!%p175_p10), 0.0   ;;  %vm795_vm0 = vmmov (!%p175_p10), 0   ;;  %s882_s7 = sand.u32 (!%p175_p10), 1, %s776_s13   ;;  %vm224_vm1 = vcmask (!%p175_p10), 64512  }
  0x11   : > { %178 = sbr.rel (%p175_p10) target bundleno = 410 (0x19a), region = 28  ;;  %610 = vmatprep.subr.mxu0 (!%p175_p10), %v794_v0  ;;  %612 = vmatprep.mubr.msk.f32.mxu0 (!%p175_p10), %vm795_vm0, %v794_v0  ;;  %s594_s8 = sshll.u32 (!%p175_p10), %s882_s7, 3 }
  0x12   : > { %615 = vmatprep.subr.mxu1 (!%p175_p10), %v794_v0  ;;  %617 = vmatprep.mubr.msk.f32.mxu1 (!%p175_p10), %vm795_vm0, %v794_v0  ;;  %s200_s9 = scalar_lea.vmem (!%p175_p10), [#allocation2], %s594_s8  ;;  %s888_s10 = scalar_lea.vmem (!%p175_p10), [#allocation4], %s594_s8 }
  0x13   : > { %225 = vst.msk [vmem:[%s200_s9] sm:$0xff] (!%p175_p10), %vm224_vm1, %v794_v0  ;;  %226 = vst.msk [vmem:[%s888_s10] sm:$0xff] (!%p175_p10), %vm224_vm1, %v794_v0  ;;  %s602_s11 = sshll.u32 (!%p175_p10), %s784_s15, 7  ;;  %s465_s18 = sshll.u32 (!%p175_p10), %s200_s9, 4  ;;  %s900_s18 = int_to_ptr.vmem [resolvable:$true] %s465_s18 }
  0x14   : > { %s898_s23 = scalar_lea.hbm (!%p175_p10), %s986_s2, %s602_s11  ;;  %s682_s28 = scalar_lea.vmem (!%p175_p10), %s900_s18, 128 }
  0x15   : > { %p683_p12 = scmp.ne.s32.totalorder (!%p175_p10), %s900_s18, %s682_s28  ;;  %s796_s29 = smov (!%p175_p10), [#allocation2]  }
  0x17   : > { %p684_p13 = pnand (!%p175_p10), %p683_p12, %p858_p4 }
  0x18   : > { %s210_s26 = scalar_select %p209_p11, %s784_s15, 1 }
  0x19   : > { %p685_p0 = pneg %p684_p13 }
  0x1a   : > { %s596_s27 = sshll.u32 %s210_s26, 3  ;;  %v229_v5 = vld [vmem:[%s200_s9] sm:$0xff]  ;;  %v338_v9 = vld [vmem:[%s888_s10] sm:$0xff]  ;;  %s478_s26 = sshll.u32 %s888_s10, 4  ;;  %s936_s26 = int_to_ptr.vmem [resolvable:$true] %s478_s26 }
  0x1b   : > { %s212_s30 = scalar_lea.vmem %s984_s0, %s596_s27  ;;  %s218_s6 = scalar_lea.vmem %s985_s1, %s596_s27 }
  0x1c   : > { %v227_v1 = vld [vmem:[%s212_s30] sm:$0xff]  ;;  %s447_s27 = scalar_lea.sflag [#allocation3], %s882_s7  ;;  %s686_s30 = sshll.u32 %s796_s29, 4  ;;  %s687_s30 = int_to_ptr.vmem [resolvable:$false] %s686_s30 }
  0x1d   : > { %230 = vxpose.xlu0.b32.start.end [1/1] (short) (narrow) %v227_v1, 8  ;;  %v228_v2 = vld [vmem:[%s218_s6] sm:$0xff]  ;;  %611 = vmatpush3.msra.mxu0 %v227_v1  ;;  %s688_s4 = scalar_lea.vmem %s687_s30, 256  ;;  %p689_p1 = scmp.lt.s32.totalorder %s900_s18, %s687_s30 }
  0x1e   : > { %616 = vmatpush3.msra.mxu1 %v228_v2  ;;  %p690_p2 = scmp.lt.s32.totalorder %s688_s4, %s682_s28 }
  0x20   : > { %p691_p3 = por %p690_p2, %p689_p1 }
  0x21   : > { %339 = vxpose.xlu0.b32.start.end [1/1] (short) (narrow) %v228_v2, 8 }
  0x22   : > { %p692_p5 = pnand %p691_p3, %p685_p0 }
  0x9d   : > { %v246_v3 = vpop.trf.xlu0 }
  0x9e   : > { %613 = vmatmul.mubr.msk.f32.vlgmr.msra.gmra.mrb[0].mxu0 %vm224_vm1, %v246_v3 }
  0xa1   : > { %v355_v4 = vpop.trf.xlu0 }
  0xa2   : > { %618 = vmatmul.mubr.msk.f32.vlgmr.msra.gmra.mrb[0].mxu1 %vm224_vm1, %v355_v4 }
 0x171   : > { %v332_v6 = vpop.f32.mrb[0].mxu0 }
 0x172   : > { %v336_v7 = vadd.f32 %v332_v6, %v229_v5  ;;  %v614_v8 = vpop.f32.mrb[1].mxu0 }
 0x174   : > { %337 = vst.msk [vmem:[%s200_s9] sm:$0xff] %vm224_vm1, %v336_v7 }
 0x175   : > { %v440_v10 = vpop.f32.mrb[0].mxu1 }
 0x176   : > { %695 = shalt.err (!%p692_p5)
}
 0x177   : > { %s696_s5 = scalar_lea.hbm %s898_s23, 128  ;;  %s700_s9 = scalar_lea.hbm %s986_s2, 256 }
 0x178   : > { %p697_p6 = scmp.ne.s32.totalorder %s898_s23, %s696_s5  ;;  %p701_p10 = scmp.lt.u32.totalorder %s898_s23, %s986_s2 }
 0x179   : > { %p702_p11 = scmp.lt.u32.totalorder %s700_s9, %s696_s5  ;;  %p704_p13 = scmp.lt.u32.totalorder %s696_s5, %s898_s23 }
 0x17a   : > { %p698_p7 = pnand %p697_p6, %p858_p4 }
 0x17b   : > { %p703_p12 = por %p702_p11, %p701_p10 }
 0x17c   : > { %p699_p9 = pneg %p698_p7 }
 0x17d   : > { %p705_p0 = por %p704_p13, %p703_p12 }
 0x17f   : > { %p706_p1 = pnand %p705_p0, %p699_p9 }
 0x181   : > { %709 = shalt.err (!%p706_p1)
}
 0x182   : > { %620 = dma.vmem_to_hbm [thread:$0]  (%p858_p4), %s900_s18, 128, %s898_s23, %s447_s27   ;;  %v444_v11 = vadd.f32 %v440_v10, %v338_v9  ;;  %v619_v12 = vpop.f32.mrb[1].mxu1 }
 0x183   : > { %s932_s30 = scalar_lea.hbm %s987_s3, %s602_s11  ;;  %s452_s4 = scalar_lea.sflag [#allocation5], %s882_s7 }
 0x184   : > { %445 = vst.msk [vmem:[%s888_s10] sm:$0xff] %vm224_vm1, %v444_v11  ;;  %s710_s5 = scalar_lea.vmem %s936_s26, 128  ;;  %s797_s15 = smov [#allocation4]  }
 0x185   : > { %p711_p2 = scmp.ne.s32.totalorder %s936_s26, %s710_s5  ;;  %s714_s18 = sshll.u32 %s797_s15, 4  ;;  %s715_s18 = int_to_ptr.vmem [resolvable:$false] %s714_s18 }
 0x186   : > { %s716_s23 = scalar_lea.vmem %s715_s18, 256  ;;  %p717_p6 = scmp.lt.s32.totalorder %s936_s26, %s715_s18 }
 0x187   : > { %p712_p3 = pnand %p711_p2, %p858_p4  ;;  %p718_p7 = scmp.lt.s32.totalorder %s716_s23, %s710_s5 }
 0x189   : > { %p713_p5 = pneg %p712_p3  ;;  %p719_p9 = por %p718_p7, %p717_p6 }
 0x18b   : > { %p720_p10 = pnand %p719_p9, %p713_p5 }
 0x18d   : > { %723 = shalt.err (!%p720_p10)
}
 0x18e   : > { %s724_s7 = scalar_lea.hbm %s932_s30, 128  ;;  %s728_s27 = scalar_lea.hbm %s987_s3, 256 }
 0x18f   : > { %p725_p11 = scmp.ne.s32.totalorder %s932_s30, %s724_s7  ;;  %p729_p0 = scmp.lt.u32.totalorder %s932_s30, %s987_s3 }
 0x190   : > { %p730_p1 = scmp.lt.u32.totalorder %s728_s27, %s724_s7  ;;  %p732_p3 = scmp.lt.u32.totalorder %s724_s7, %s932_s30 }
 0x191   : > { %p726_p12 = pnand %p725_p11, %p858_p4 }
 0x192   : > { %p731_p2 = por %p730_p1, %p729_p0 }
 0x193   : > { %p727_p13 = pneg %p726_p12 }
 0x194   : > { %p733_p5 = por %p732_p3, %p731_p2 }
 0x196   : > { %p734_p6 = pnand %p733_p5, %p727_p13 }
 0x198   : > { %737 = shalt.err (!%p734_p6)
}
 0x199   : > { %621 = dma.vmem_to_hbm [thread:$0]  (%p858_p4), %s936_s26, 128, %s932_s30, %s452_s4  }
 0x19a PF: > { %p631_p7 = scmp.ge.s32.totalorder %s792_s17, 2  ;;  %s490_s9 = sand.u32 1, %s772_s12  }
 0x19b   : > { %s491_s19 = scalar_lea.sflag [#allocation3], %s490_s9 }
 0x19c   : > { %p625_p9 = pnand %p631_p7, %p865_p8 }
 0x19e   : > { %763 = dma.done.wait (!%p625_p9), %s491_s19, 128  }
 0x19f   : > { %765 = vsyncadd (!%p625_p9), %s491_s19, 4294967168  ;;  %s500_s21 = scalar_lea.sflag [#allocation5], %s490_s9 }
 0x1a0   : > { %767 = dma.done.wait (!%p625_p9), %s500_s21, 128  }
 0x1a1   : > { %769 = vsyncadd (!%p625_p9), %s500_s21, 4294967168  ;;  %s20_s17 = sadd.s32 1, %s792_s17   ;;  %s990_s12 = smov %s776_s13 }
 0x1a2   : > { %p17_p10 = scmp.ge.s32.totalorder %s20_s17, 4   ;;  %s991_s13 = smov %s780_s14 }
 0x1a3   : > { %s992_s14 = smov %s871_s25  ;;  %s993_s15 = smov %s788_s16 }
 0x1a4   : > { %s994_s16 = smov %s996_s20  ;;  %19 = sbr.rel (!%p17_p10) target bundleno = 6 (0x6), region = 87 }
 0x1ab   :  { %505 = vsyncpa [#allocation3], 1 }
 0x1ac   :  { %507 = vsyncpa [#allocation3 + $0x1], 1 }
 0x1ad   :  { %508 = vsyncpa [#allocation5], 1 }
 0x1ae   :  { %510 = vsyncpa [#allocation5 + $0x1], 1 }

</bundles_post_ra>
